<compile_context>
chip_gen: v5e
topology: v5e:2x2
jax: 0.10.0
libtpu: 0.0.40
codegen_flags: <defaults>
</compile_context>

<pallas_src>
import functools

import jax
import jax.numpy as jnp
from jax.experimental import pallas as pl
from jax.experimental.pallas import tpu as pltpu


def _round_up(n, m):
    return ((n + m - 1) // m) * m


def _vmem_capacity_bytes():
    try:
        return int(pltpu.get_tpu_info().vmem_capacity_bytes)
    except Exception:
        return 128 << 20  # v5e / v6e physical VMEM


# --------------------------------------------------------------------------
# Kernels
# --------------------------------------------------------------------------

def _ffn_resident_kernel(x_ref, w1_ref, b1_ref, w2_ref, b2_ref, o_ref):
    # Weights fully resident in VMEM (constant block index -> single DMA).
    h = jnp.dot(x_ref[...], w1_ref[...], preferred_element_type=jnp.float32)
    h = jnp.maximum(h + b1_ref[...], 0.0)
    y = jnp.dot(h.astype(w2_ref.dtype), w2_ref[...],
                preferred_element_type=jnp.float32) + b2_ref[...]
    o_ref[...] = y.astype(o_ref.dtype)


def _ffn_tiled_kernel(x_ref, w1_ref, b1_ref, w2_ref, b2_ref, o_ref, acc_ref):
    # Hidden dim tiled as a reduction ("arbitrary") axis with an f32 accumulator.
    h_idx = pl.program_id(1)
    nh = pl.num_programs(1)

    @pl.when(h_idx == 0)
    def _():
        acc_ref[...] = jnp.zeros_like(acc_ref)

    h = jnp.dot(x_ref[...], w1_ref[...], preferred_element_type=jnp.float32)
    h = jnp.maximum(h + b1_ref[...], 0.0)
    partial = jnp.dot(h.astype(w2_ref.dtype), w2_ref[...],
                      preferred_element_type=jnp.float32)

    is_last = h_idx == nh - 1

    @pl.when(jnp.logical_not(is_last))
    def _():
        acc_ref[...] += partial

    @pl.when(is_last)
    def _():
        # Fold the last partial into the finalize store (saves one acc RMW).
        o_ref[...] = (acc_ref[...] + partial + b2_ref[...]).astype(o_ref.dtype)


# --------------------------------------------------------------------------
# VMEM footprint models (double-buffered pipeline buffers + scratch/temporaries)
# --------------------------------------------------------------------------

def _resident_bytes(tm, d_in_p, h_p, d_out_p, cb, ob):
    return (2 * tm * d_in_p * cb          # x tile (double buffered)
            + 2 * d_in_p * h_p * cb       # W1^T
            + 2 * h_p * 4                 # b1 (f32)
            + 2 * h_p * d_out_p * cb      # W2^T
            + 2 * d_out_p * 4             # b2 (f32)
            + 2 * tm * d_out_p * ob       # out tile
            + tm * h_p * 4                # f32 hidden activation
            + tm * d_out_p * 4)           # f32 result before cast


def _tiled_bytes(tm, th, d_in_p, d_out_p, cb, ob):
    return (2 * tm * d_in_p * cb          # x tile
            + 2 * d_in_p * th * cb        # W1^T slice
            + 2 * th * 4                  # b1 slice
            + 2 * th * d_out_p * cb       # W2^T slice
            + 2 * d_out_p * 4             # b2
            + 2 * tm * d_out_p * ob       # out tile
            + tm * d_out_p * 4            # f32 accumulator scratch
            + tm * th * 4                 # f32 hidden activation
            + tm * d_out_p * 4)           # f32 partial


# --------------------------------------------------------------------------
# Forward (jitted; weights arrive pre-padded / pre-transposed / pre-cast)
# --------------------------------------------------------------------------

@functools.partial(jax.jit, static_argnames=("d_out", "tm_target", "th_target"))
def _ffn_forward(x, w1t, b1p, w2t, b2p, *, d_out, tm_target=512, th_target=1024):
    orig_dtype = x.dtype
    *lead, d_in = x.shape
    M = 1
    for s in lead:
        M *= s

    d_in_p, h_p = w1t.shape
    d_out_p = w2t.shape[1]
    cdt = jnp.dtype(w1t.dtype)
    cb = cdt.itemsize
    ob = jnp.dtype(orig_dtype).itemsize
    sub = 16 if cdt == jnp.dtype(jnp.bfloat16) else 8

    capacity = _vmem_capacity_bytes()
    budget = int(capacity * 0.75)  # ~96 MiB on v5e/v6e, ~48 MiB on v7x

    # Token tile: large, multiple of the sublane packing, never beyond padded M.
    tm_cap = _round_up(max(M, 1), sub)
    tm = min(_round_up(tm_target, sub), tm_cap)

    # ---- weights-resident fast path selection (static Python) ----
    resident = False
    tm_floor = min(tm, max(sub, 128))
    t = tm
    while True:
        if _resident_bytes(t, d_in_p, h_p, d_out_p, cb, ob) <= budget:
            resident, tm = True, t
            break
        nt = max(tm_floor, _round_up(t // 2, sub))
        if nt == t:
            break
        t = nt

    th = h_p
    if not resident:
        # Hidden-dim slice: largest multiple-of-128 divisor of h_p <= th_target.
        units = h_p // 128
        divs = sorted({128 * d for d in range(1, units + 1) if units % d == 0})
        th_cands = [d for d in divs if d <= th_target] or [divs[0]]
        th = th_cands[-1]
        while _tiled_bytes(tm, th, d_in_p, d_out_p, cb, ob) > budget:
            smaller = [d for d in th_cands if d < th]
            if smaller:
                th = smaller[-1]
            elif tm > sub:
                tm = max(sub, _round_up(tm // 2, sub))
            else:
                break  # smallest configuration; let the compiler try anyway

    M_p = _round_up(max(M, 1), tm)

    # Per-call x prep only (weights were prepped once at init).
    x2 = jnp.pad(x.reshape(M, d_in), ((0, M_p - M), (0, d_in_p - d_in)))
    x2 = x2.astype(cdt)

    footprint = (_resident_bytes(tm, d_in_p, h_p, d_out_p, cb, ob) if resident
                 else _tiled_bytes(tm, th, d_in_p, d_out_p, cb, ob))
    vmem_limit = int(min(capacity * 9 // 10, max(budget, footprint + (4 << 20))))
    vmem_limit = max(vmem_limit, 32 << 20)

    if resident:
        grid_spec = pltpu.PrefetchScalarGridSpec(
            num_scalar_prefetch=0,
            grid=(M_p // tm,),
            in_specs=[
                pl.BlockSpec((tm, d_in_p), lambda i: (i, 0)),       # x tile
                pl.BlockSpec((d_in_p, h_p), lambda i: (0, 0)),      # W1^T (resident)
                pl.BlockSpec((1, h_p), lambda i: (0, 0)),           # b1
                pl.BlockSpec((h_p, d_out_p), lambda i: (0, 0)),     # W2^T (resident)
                pl.BlockSpec((1, d_out_p), lambda i: (0, 0)),       # b2
            ],
            out_specs=pl.BlockSpec((tm, d_out_p), lambda i: (i, 0)),
        )
        out = pl.pallas_call(
            _ffn_resident_kernel,
            out_shape=jax.ShapeDtypeStruct((M_p, d_out_p), orig_dtype),
            grid_spec=grid_spec,
            compiler_params=pltpu.CompilerParams(
                dimension_semantics=("parallel",),
                vmem_limit_bytes=vmem_limit,
            ),
        )(x2, w1t, b1p, w2t, b2p)
    else:
        grid_spec = pltpu.PrefetchScalarGridSpec(
            num_scalar_prefetch=0,
            grid=(M_p // tm, h_p // th),
            in_specs=[
                pl.BlockSpec((tm, d_in_p), lambda i, h: (i, 0)),     # x tile
                pl.BlockSpec((d_in_p, th), lambda i, h: (0, h)),     # W1^T slice
                pl.BlockSpec((1, th), lambda i, h: (0, h)),          # b1 slice
                pl.BlockSpec((th, d_out_p), lambda i, h: (h, 0)),    # W2^T slice
                pl.BlockSpec((1, d_out_p), lambda i, h: (0, 0)),     # b2
            ],
            out_specs=pl.BlockSpec((tm, d_out_p), lambda i, h: (i, 0)),
            scratch_shapes=[pltpu.VMEM((tm, d_out_p), jnp.float32)],
        )
        out = pl.pallas_call(
            _ffn_tiled_kernel,
            out_shape=jax.ShapeDtypeStruct((M_p, d_out_p), orig_dtype),
            grid_spec=grid_spec,
            compiler_params=pltpu.CompilerParams(
                dimension_semantics=("parallel", "arbitrary"),
                vmem_limit_bytes=vmem_limit,
            ),
        )(x2, w1t, b1p, w2t, b2p)

    return out[:M, :d_out].reshape(*lead, d_out)


# --------------------------------------------------------------------------
# Module-style wrapper: weight preprocessing hoisted to construction time
# --------------------------------------------------------------------------

class PositionWiseFFN:
    """Pallas-TPU PositionWiseFFN (Linear -> ReLU -> Linear).

    w1: [H, D_in], b1: [H], w2: [D_out, H], b2: [D_out]  (nn.Linear layout).
    compute_dtype: dtype for X/W1/W2 inside the kernel (bf16 recommended for
    production sizes on all TPU generations); f32 accumulation always.
    """

    def __init__(self, w1, b1, w2, b2, compute_dtype=None):
        w1 = jnp.asarray(w1); b1 = jnp.asarray(b1)
        w2 = jnp.asarray(w2); b2 = jnp.asarray(b2)
        cdt = jnp.dtype(compute_dtype) if compute_dtype is not None else jnp.dtype(w1.dtype)

        H, d_in = w1.shape
        d_out = w2.shape[0]
        d_in_p = _round_up(d_in, 128)
        h_p = _round_up(H, 128)
        d_out_p = _round_up(d_out, 128)

        # One-time pad / transpose / cast (exact: padded rows/cols contribute 0).
        self.w1t = jnp.pad(w1.T, ((0, d_in_p - d_in), (0, h_p - H))).astype(cdt)
        self.w2t = jnp.pad(w2.T, ((0, h_p - H), (0, d_out_p - d_out))).astype(cdt)
        self.b1 = jnp.pad(b1, (0, h_p - H)).reshape(1, h_p).astype(jnp.float32)
        self.b2 = jnp.pad(b2, (0, d_out_p - d_out)).reshape(1, d_out_p).astype(jnp.float32)
        self.d_out = int(d_out)

    def __call__(self, x, *, tm_target=512, th_target=1024):
        return _ffn_forward(x, self.w1t, self.b1, self.w2t, self.b2,
                            d_out=self.d_out,
                            tm_target=tm_target, th_target=th_target)


if __name__ == "__main__":
    # Small shapes consistent with the module's forward: [batch, seq, input_dim]
    B, S = 2, 8
    input_dim, hidden_dim, output_dim = 32, 64, 32

    key = jax.random.PRNGKey(0)
    kx, kw1, kb1, kw2, kb2 = jax.random.split(key, 5)

    x = jax.random.normal(kx, (B, S, input_dim), dtype=jnp.float32)
    # Same parameter shapes as nn.Linear: weight [out, in], bias [out]
    w1 = jax.random.normal(kw1, (hidden_dim, input_dim), dtype=jnp.float32) * 0.1
    b1 = jax.random.normal(kb1, (hidden_dim,), dtype=jnp.float32) * 0.1
    w2 = jax.random.normal(kw2, (output_dim, hidden_dim), dtype=jnp.float32) * 0.1
    b2 = jax.random.normal(kb2, (output_dim,), dtype=jnp.float32) * 0.1

    ffn = PositionWiseFFN(w1, b1, w2, b2)          # weight prep happens once here
    y = ffn(x)
    jax.block_until_ready(y)

    # Pure-JAX reference check
    ref = jnp.maximum(x @ w1.T + b1, 0.0) @ w2.T + b2
    assert y.shape == (B, S, output_dim)
    assert jnp.allclose(y, ref, atol=1e-4, rtol=1e-4)

    print("KERNEL_OK")
</pallas_src>

<mosaic_0001>
module attributes {stable_mosaic.version = 11 : i64} {
  func.func @_ffn_resident_kernel(%arg0: i32, %arg1: memref<16x128xf32, #tpu.memory_space<vmem>>, %arg2: memref<128x128xf32, #tpu.memory_space<vmem>>, %arg3: memref<1x128xf32, #tpu.memory_space<vmem>>, %arg4: memref<128x128xf32, #tpu.memory_space<vmem>>, %arg5: memref<1x128xf32, #tpu.memory_space<vmem>>, %arg6: memref<16x128xf32, #tpu.memory_space<vmem>>) attributes {dimension_semantics = [#tpu.dimension_semantics<parallel>], iteration_bounds = array<i64: 1>, scalar_prefetch = 0 : i64, scratch_operands = 0 : i64, tpu.core_type = #tpu.core_type<tc>, window_params = [{transform_indices = @transform_0, window_bounds = array<i64: 16, 128>}, {pipeline_mode = #tpu.pipeline_mode<synchronous>, transform_indices = @transform_1, window_bounds = array<i64: 128, 128>}, {pipeline_mode = #tpu.pipeline_mode<synchronous>, transform_indices = @transform_2, window_bounds = array<i64: 1, 128>}, {pipeline_mode = #tpu.pipeline_mode<synchronous>, transform_indices = @transform_3, window_bounds = array<i64: 128, 128>}, {pipeline_mode = #tpu.pipeline_mode<synchronous>, transform_indices = @transform_4, window_bounds = array<i64: 1, 128>}, {transform_indices = @transform_5, window_bounds = array<i64: 16, 128>}]} {
    %c0 = arith.constant 0 : index
    %c0_0 = arith.constant 0 : index
    %0 = vector.load %arg1[%c0, %c0_0] : memref<16x128xf32, #tpu.memory_space<vmem>>, vector<16x128xf32>
    %c0_1 = arith.constant 0 : index
    %c0_2 = arith.constant 0 : index
    %1 = vector.load %arg2[%c0_1, %c0_2] : memref<128x128xf32, #tpu.memory_space<vmem>>, vector<128x128xf32>
    %cst = arith.constant dense<0.000000e+00> : vector<16x128xf32>
    %2 = tpu.matmul %0, %1, %cst {dimension_numbers = #tpu.dot_dimension_numbers<[1], [0], [0], [1], [0, 0, 1, 1], [], []>} : vector<16x128xf32>, vector<128x128xf32>, vector<16x128xf32> -> vector<16x128xf32>
    %c0_3 = arith.constant 0 : index
    %c0_4 = arith.constant 0 : index
    %3 = vector.load %arg3[%c0_3, %c0_4] : memref<1x128xf32, #tpu.memory_space<vmem>>, vector<1x128xf32>
    %4 = vector.broadcast %3 : vector<1x128xf32> to vector<16x128xf32>
    %5 = arith.addf %2, %4 : vector<16x128xf32>
    %cst_5 = arith.constant 0.000000e+00 : f32
    %6 = vector.broadcast %cst_5 : f32 to vector<16x128xf32>
    %7 = arith.maximumf %5, %6 : vector<16x128xf32>
    %c0_6 = arith.constant 0 : index
    %c0_7 = arith.constant 0 : index
    %8 = vector.load %arg4[%c0_6, %c0_7] : memref<128x128xf32, #tpu.memory_space<vmem>>, vector<128x128xf32>
    %cst_8 = arith.constant dense<0.000000e+00> : vector<16x128xf32>
    %9 = tpu.matmul %7, %8, %cst_8 {dimension_numbers = #tpu.dot_dimension_numbers<[1], [0], [0], [1], [0, 0, 1, 1], [], []>} : vector<16x128xf32>, vector<128x128xf32>, vector<16x128xf32> -> vector<16x128xf32>
    %c0_9 = arith.constant 0 : index
    %c0_10 = arith.constant 0 : index
    %10 = vector.load %arg5[%c0_9, %c0_10] : memref<1x128xf32, #tpu.memory_space<vmem>>, vector<1x128xf32>
    %11 = vector.broadcast %10 : vector<1x128xf32> to vector<16x128xf32>
    %12 = arith.addf %9, %11 : vector<16x128xf32>
    %c0_11 = arith.constant 0 : index
    %c0_12 = arith.constant 0 : index
    %13 = vector.load %arg6[%c0_11, %c0_12] : memref<16x128xf32, #tpu.memory_space<vmem>>, vector<16x128xf32>
    tpu.vector_store %arg6[%c0_11, %c0_12], %12 {strides = array<i32>} : memref<16x128xf32, #tpu.memory_space<vmem>>, vector<16x128xf32>,
    return
  }
  func.func @transform_0(%arg0: i32) -> (i32, i32) {
    %c0_i32 = arith.constant 0 : i32
    %c0_i32_0 = arith.constant 0 : i32
    return %arg0, %c0_i32 : i32, i32
  }
  func.func @transform_1(%arg0: i32) -> (i32, i32) {
    %c0_i32 = arith.constant 0 : i32
    %c0_i32_0 = arith.constant 0 : i32
    %c0_i32_1 = arith.constant 0 : i32
    return %c0_i32, %c0_i32_0 : i32, i32
  }
  func.func @transform_2(%arg0: i32) -> (i32, i32) {
    %c0_i32 = arith.constant 0 : i32
    %c0_i32_0 = arith.constant 0 : i32
    %c0_i32_1 = arith.constant 0 : i32
    return %c0_i32, %c0_i32_0 : i32, i32
  }
  func.func @transform_3(%arg0: i32) -> (i32, i32) {
    %c0_i32 = arith.constant 0 : i32
    %c0_i32_0 = arith.constant 0 : i32
    %c0_i32_1 = arith.constant 0 : i32
    return %c0_i32, %c0_i32_0 : i32, i32
  }
  func.func @transform_4(%arg0: i32) -> (i32, i32) {
    %c0_i32 = arith.constant 0 : i32
    %c0_i32_0 = arith.constant 0 : i32
    %c0_i32_1 = arith.constant 0 : i32
    return %c0_i32, %c0_i32_0 : i32, i32
  }
  func.func @transform_5(%arg0: i32) -> (i32, i32) {
    %c0_i32 = arith.constant 0 : i32
    %c0_i32_0 = arith.constant 0 : i32
    return %arg0, %c0_i32 : i32, i32
  }
}

</mosaic_0001>

<bundles_post_ra>
// kernel: _ffn_forward.1
= control target key start
LH: loop header
LB: loop body
LE: loop exit
PB: predicated region body
PF: predicated region fallthrough
CT: control target
= control target key end

     0   :  { %10 = vsyncpa [#allocation3], 0  ;;  %s298_s0 = inlined_call_operand.vmem [shape: f32[16,128], index: 0, kind: input, shape index: {}]   ;;  %s299_s1 = inlined_call_operand.hbm [shape: f32[128,128], index: 1, kind: input, shape index: {}]   ;;  %s300_s2 = inlined_call_operand.vmem [shape: f32[1,128], index: 2, kind: input, shape index: {}]   ;;  %s301_s3 = inlined_call_operand.hbm [shape: f32[128,128], index: 3, kind: input, shape index: {}]   ;;  %s302_s4 = inlined_call_operand.vmem [shape: f32[1,128], index: 4, kind: input, shape index: {}]   ;;  %s303_s5 = inlined_call_operand.vmem [shape: f32[16,128], index: 5, kind: output, shape index: {}]  }
   0x1   :  { %s18_s20 = sshll.u32 %s299_s1, 4  ;;  %s19_s20 = int_to_ptr.hbm [resolvable:$true] %s18_s20 }
   0x2   :  { %11 = vsyncpa [#allocation5], 0  ;;  %s240_s21 = smov [#allocation2]   ;;  %s33_s25 = sshll.u32 %s301_s3, 4  ;;  %s34_s25 = int_to_ptr.hbm [resolvable:$true] %s33_s25 }
   0x3   :  { %s20_s22 = sshll.u32 %s240_s21, 4  ;;  %s241_s26 = smov 128   ;;  %s21_s22 = int_to_ptr.vmem [resolvable:$true] %s20_s22 }
   0x4   :  { %s242_s27 = smov 8   ;;  %s243_s28 = smov [#allocation4]  }
   0x5   :  { %26 = dma.hbm_to_vmem [thread:$0]  %s19_s20, 2048, %s21_s22, [#allocation3], %s241_s26, %s241_s26, %s242_s27  }
   0x6   :  { %s35_s29 = sshll.u32 %s243_s28, 4  ;;  %s36_s29 = int_to_ptr.vmem [resolvable:$true] %s35_s29 }
   0x7   :  { %41 = dma.hbm_to_vmem [thread:$0]  %s34_s25, 2048, %s36_s29, [#allocation5], %s241_s26, %s241_s26, %s242_s27  }
   0x8   :  { %236 = dma.done.wait [#allocation3], 2048  }
   0x9   :  { %237 = vsyncadd [#allocation3], 4294965248 }
   0xa   :  { %238 = dma.done.wait [#allocation5], 2048  }
   0xb   :  { %239 = vsyncadd [#allocation5], 4294965248  ;;  %v69_v0 = vld [vmem:[#allocation2 + $0x78] sm:$0xff]  ;;  %v68_v1 = vld [vmem:[#allocation2 + $0x70] sm:$0xff] }
   0xc   :  { %150 = vmatpush.msra.mxu2 %v69_v0  ;;  %74 = vmatpush.msra.mxu0 %v69_v0  ;;  %v67_v2 = vld [vmem:[#allocation2 + $0x68] sm:$0xff]  ;;  %v66_v3 = vld [vmem:[#allocation2 + $0x60] sm:$0xff]  ;;  %v65_v4 = vld [vmem:[#allocation2 + $0x58] sm:$0xff] }
   0xd   :  { %v114_v5 = vld [vmem:[#allocation4 + $0x78] sm:$0xff]  ;;  %v113_v6 = vld [vmem:[#allocation4 + $0x70] sm:$0xff]  ;;  %v112_v8 = vld [vmem:[#allocation4 + $0x68] sm:$0xff] }
   0xe   :  { %151 = vmatpush.msra.mxu2 %v68_v1  ;;  %75 = vmatpush.msra.mxu0 %v68_v1  ;;  %v64_v7 = vld [vmem:[#allocation2 + $0x50] sm:$0xff]  ;;  %v63_v9 = vld [vmem:[#allocation2 + $0x48] sm:$0xff]  ;;  %v111_v10 = vld [vmem:[#allocation4 + $0x60] sm:$0xff] }
   0xf   :  { %166 = vmatpush.msra.mxu3 %v114_v5  ;;  %119 = vmatpush.msra.mxu1 %v114_v5  ;;  %v62_v11 = vld [vmem:[#allocation2 + $0x40] sm:$0xff]  ;;  %v110_v12 = vld [vmem:[#allocation4 + $0x58] sm:$0xff]  ;;  %v109_v14 = vld [vmem:[#allocation4 + $0x50] sm:$0xff] }
  0x10   :  { %152 = vmatpush.msra.mxu2 %v67_v2  ;;  %76 = vmatpush.msra.mxu0 %v67_v2  ;;  %v61_v13 = vld [vmem:[#allocation2 + $0x38] sm:$0xff]  ;;  %v60_v15 = vld [vmem:[#allocation2 + $0x30] sm:$0xff]  ;;  %v108_v16 = vld [vmem:[#allocation4 + $0x48] sm:$0xff] }
  0x11   :  { %167 = vmatpush.msra.mxu3 %v113_v6  ;;  %120 = vmatpush.msra.mxu1 %v113_v6  ;;  %v59_v17 = vld [vmem:[#allocation2 + $0x28] sm:$0xff]  ;;  %v107_v18 = vld [vmem:[#allocation4 + $0x40] sm:$0xff]  ;;  %v106_v20 = vld [vmem:[#allocation4 + $0x38] sm:$0xff] }
  0x12   :  { %153 = vmatpush.msra.mxu2 %v66_v3  ;;  %77 = vmatpush.msra.mxu0 %v66_v3  ;;  %v58_v19 = vld [vmem:[#allocation2 + $0x20] sm:$0xff]  ;;  %v57_v21 = vld [vmem:[#allocation2 + $0x18] sm:$0xff]  ;;  %v105_v22 = vld [vmem:[#allocation4 + $0x30] sm:$0xff] }
  0x13   :  { %168 = vmatpush.msra.mxu3 %v112_v8  ;;  %121 = vmatpush.msra.mxu1 %v112_v8  ;;  %v56_v23 = vld [vmem:[#allocation2 + $0x10] sm:$0xff]  ;;  %v104_v24 = vld [vmem:[#allocation4 + $0x28] sm:$0xff]  ;;  %v103_v26 = vld [vmem:[#allocation4 + $0x20] sm:$0xff] }
  0x14   :  { %154 = vmatpush.msra.mxu2 %v65_v4  ;;  %78 = vmatpush.msra.mxu0 %v65_v4  ;;  %v55_v25 = vld [vmem:[#allocation2 + $0x8] sm:$0xff]  ;;  %v54_v27 = vld [vmem:[#allocation2] sm:$0xff]  ;;  %v102_v30 = vld [vmem:[#allocation4 + $0x18] sm:$0xff] }
  0x15   :  { %169 = vmatpush.msra.mxu3 %v111_v10  ;;  %122 = vmatpush.msra.mxu1 %v111_v10  ;;  %v53_v28 = vld [vmem:[%s298_s0 + $0x8] sm:$0xff]  ;;  %v52_v29 = vld [vmem:[%s298_s0] sm:$0xff]  ;;  %v101_v31 = vld [vmem:[#allocation4 + $0x10] sm:$0xff] }
  0x16   :  { %155 = vmatpush.msra.mxu2 %v64_v7  ;;  %79 = vmatpush.msra.mxu0 %v64_v7  ;;  %v100_v32 = vld [vmem:[#allocation4 + $0x8] sm:$0xff]  ;;  %v99_v33 = vld [vmem:[#allocation4] sm:$0xff] }
  0x17   :  { %170 = vmatpush.msra.mxu3 %v110_v12  ;;  %123 = vmatpush.msra.mxu1 %v110_v12  ;;  %v186_v34 = vld [vmem:[%s300_s2] ss:$0 sm:$0xff] }
  0x18   :  { %156 = vmatpush.msra.mxu2 %v63_v9  ;;  %80 = vmatpush.msra.mxu0 %v63_v9  ;;  %v187_v41 = vld [vmem:[%s302_s4] ss:$0 sm:$0xff] }
  0x19   :  { %171 = vmatpush.msra.mxu3 %v109_v14  ;;  %124 = vmatpush.msra.mxu1 %v109_v14 }
  0x1a   :  { %157 = vmatpush.msra.mxu2 %v62_v11  ;;  %81 = vmatpush.msra.mxu0 %v62_v11 }
  0x1b   :  { %172 = vmatpush.msra.mxu3 %v108_v16  ;;  %125 = vmatpush.msra.mxu1 %v108_v16 }
  0x1c   :  { %158 = vmatpush.msra.mxu2 %v61_v13  ;;  %82 = vmatpush.msra.mxu0 %v61_v13 }
  0x1d   :  { %173 = vmatpush.msra.mxu3 %v107_v18  ;;  %126 = vmatpush.msra.mxu1 %v107_v18 }
  0x1e   :  { %159 = vmatpush.msra.mxu2 %v60_v15  ;;  %83 = vmatpush.msra.mxu0 %v60_v15 }
  0x1f   :  { %174 = vmatpush.msra.mxu3 %v106_v20  ;;  %127 = vmatpush.msra.mxu1 %v106_v20 }
  0x20   :  { %160 = vmatpush.msra.mxu2 %v59_v17  ;;  %84 = vmatpush.msra.mxu0 %v59_v17 }
  0x21   :  { %175 = vmatpush.msra.mxu3 %v105_v22  ;;  %128 = vmatpush.msra.mxu1 %v105_v22 }
  0x22   :  { %161 = vmatpush.msra.mxu2 %v58_v19  ;;  %85 = vmatpush.msra.mxu0 %v58_v19 }
  0x23   :  { %176 = vmatpush.msra.mxu3 %v104_v24  ;;  %129 = vmatpush.msra.mxu1 %v104_v24 }
  0x24   :  { %162 = vmatpush.msra.mxu2 %v57_v21  ;;  %86 = vmatpush.msra.mxu0 %v57_v21 }
  0x25   :  { %177 = vmatpush.msra.mxu3 %v103_v26  ;;  %130 = vmatpush.msra.mxu1 %v103_v26 }
  0x26   :  { %163 = vmatpush.msra.mxu2 %v56_v23  ;;  %87 = vmatpush.msra.mxu0 %v56_v23 }
  0x27   :  { %178 = vmatpush.msra.mxu3 %v102_v30  ;;  %131 = vmatpush.msra.mxu1 %v102_v30 }
  0x28   :  { %164 = vmatpush.msra.mxu2 %v55_v25  ;;  %88 = vmatpush.msra.mxu0 %v55_v25 }
  0x29   :  { %179 = vmatpush.msra.mxu3 %v101_v31  ;;  %132 = vmatpush.msra.mxu1 %v101_v31 }
  0x2a   :  { %165 = vmatpush.msra.mxu2 %v54_v27  ;;  %89 = vmatpush.msra.mxu0 %v54_v27 }
  0x2b   :  { %93 = vmatmul.f32.vlgmr.msra.gmra.mxu2 %v53_v28  ;;  %90 = vmatmul.f32.vlgmr.msra.gmra.mxu0 %v52_v29 }
  0x2c   :  { %180 = vmatpush.msra.mxu3 %v100_v32  ;;  %133 = vmatpush.msra.mxu1 %v100_v32 }
  0x2e   :  { %181 = vmatpush.msra.mxu3 %v99_v33  ;;  %134 = vmatpush.msra.mxu1 %v99_v33 }
  0xa8   :  { %v91_v35 = vpop.f32.mrf.mxu0 }
  0xa9   :  { %v92_v36 = vadd.f32 %v186_v34, %v91_v35 }
  0xab   :  { %v97_v37 = vmax.f32 %v92_v36, 0.0 }
  0xad   :  { %135 = vmatmul.f32.vlgmr.msra.gmra.mxu1 %v97_v37 }
  0xae   :  { %v94_v38 = vpop.f32.mrf.mxu2 }
  0xaf   :  { %v95_v39 = vadd.f32 %v186_v34, %v94_v38 }
  0xb1   :  { %v98_v40 = vmax.f32 %v95_v39, 0.0 }
  0xb3   :  { %138 = vmatmul.f32.vlgmr.msra.gmra.mxu3 %v98_v40 }
 0x12a   :  { %v136_v42 = vpop.f32.mrf.mxu1 }
 0x12b   :  { %v137_v43 = vadd.f32 %v187_v41, %v136_v42 }
 0x12d   :  { %142 = vst [vmem:[%s303_s5] sm:$0xff] %v137_v43 }
 0x136   :  { %v139_v44 = vpop.f32.mrf.mxu3 }
 0x137   :  { %v140_v45 = vadd.f32 %v187_v41, %v139_v44 }
 0x139   :  { %143 = vst [vmem:[%s303_s5 + $0x8] sm:$0xff] %v140_v45 }
 0x13a   :  { %148 = vsyncpa [#allocation3], 1 }
 0x13b   :  { %149 = vsyncpa [#allocation5], 1 }

</bundles_post_ra>
